<compile_context>
chip_gen: v5e
topology: v5e:2x2
jax: 0.10.0
libtpu: 0.0.40
codegen_flags: <defaults>
</compile_context>

<pallas_src>
import functools
import math

import jax
import jax.numpy as jnp
from jax.experimental import pallas as pl
from jax.experimental.pallas import tpu as pltpu

NEG_SLOPE = 0.2          # GATv2Conv default negative_slope
BN_EPS = 1e-5
MASK_VAL = -1e30         # finite "minus infinity" (avoids inf-inf NaNs in online softmax)
C1 = 0.5 * (1.0 + NEG_SLOPE)   # leaky_relu(z) = C1*z + C2*|z|
C2 = 0.5 * (1.0 - NEG_SLOPE)


# ----------------------------------------------------------------------------
# Kernel 1: fused source/target projection  y = x @ [W_l | W_r]  (bf16 outputs)
# ----------------------------------------------------------------------------
def project_kernel(x_ref, w_ref, xl_ref, xr_ref, *, hc):
    y = jnp.dot(x_ref[...].astype(jnp.bfloat16), w_ref[...],
                preferred_element_type=jnp.float32)            # [T, 2*H*C] f32 acc
    xl_ref[...] = y[:, :hc].astype(jnp.bfloat16)               # source-side features
    xr_ref[...] = y[:, hc:].astype(jnp.bfloat16)               # target-side features


def gatv2_project(x, w_bf16, *, heads, out_ch, tile=256):
    n, f_in = x.shape
    hc = heads * out_ch
    assert n % tile == 0
    kern = functools.partial(project_kernel, hc=hc)
    return pl.pallas_call(
        kern,
        out_shape=(jax.ShapeDtypeStruct((n, hc), jnp.bfloat16),
                   jax.ShapeDtypeStruct((n, hc), jnp.bfloat16)),
        grid=(n // tile,),
        in_specs=[pl.BlockSpec((tile, f_in), lambda i: (i, 0)),
                  pl.BlockSpec((f_in, 2 * hc), lambda i: (0, 0))],
        out_specs=(pl.BlockSpec((tile, hc), lambda i: (i, 0)),
                   pl.BlockSpec((tile, hc), lambda i: (i, 0))),
        compiler_params=pltpu.CompilerParams(
            dimension_semantics=("parallel",)),
    )(x, w_bf16)


# ----------------------------------------------------------------------------
# Kernel 2: tiled GATv2 attention with online softmax, block-sparse skipping
#           and fused epilogue (BN+ReLU or log_softmax)
# ----------------------------------------------------------------------------
def gatv2_attn_kernel(cnt_ref, xr_ref, xl_ref, xlT_ref, sr_ref, slT_ref, att_ref,
                      bias_ref, bns_ref, bnb_ref, adj_ref, out_ref,
                      acc_ref, m_ref, l_ref, *,
                      heads, out_ch, concat, apply_bn_relu, apply_log_softmax):
    """One (i, j) tile of one GATv2Conv layer.

    cnt_ref  : SMEM [NI, NJ] int32   edges per (i,j) tile (block-sparse skip)
    xr_ref   : [TI, H*C] bf16        target-side projected features (rows i)
    xl_ref   : [TJ, H*C] bf16        source-side projected features (MXU rhs)
    xlT_ref  : [H*C, TJ] bf16        same source features, lane-dense per channel
    sr_ref   : [TI, H]  f32          <a_h, xr_i>   (separable score part)
    slT_ref  : [H, TJ]  f32          <a_h, xl_j>
    att_ref  : SMEM [1, H*C] f32     attention vector (read as scalars)
    bias/bns/bnb : [1, F_out] f32    conv bias, eval-BN scale/shift
    adj_ref  : [TI, TJ] int8         adj[i, j] = 1 iff edge j->i (incl. self loops)
    out_ref  : [TI, F_out] f32
    scratch  : acc [H, TI, C], m [H, TI, 1], l [H, TI, 1]   (online softmax state)
    """
    C = out_ch
    i = pl.program_id(0)
    j = pl.program_id(1)
    nj = pl.num_programs(1)

    @pl.when(j == 0)
    def _init():
        m_ref[...] = jnp.full_like(m_ref, MASK_VAL)
        l_ref[...] = jnp.zeros_like(l_ref)
        acc_ref[...] = jnp.zeros_like(acc_ref)

    # Block-sparse skip: tiles with no edges contribute nothing to the softmax.
    @pl.when(cnt_ref[i, j] > 0)
    def _compute():
        neigh = adj_ref[...] != 0                          # [TI, TJ] bool (no int8->f32 cast)
        xr = xr_ref[...].astype(jnp.float32)               # [TI, H*C]
        xlT = xlT_ref[...].astype(jnp.float32)             # [H*C, TJ]
        xl_bf = xl_ref[...]                                 # [TJ, H*C] bf16 (MXU rhs)
        sr = sr_ref[...]                                    # [TI, H]
        slT = slT_ref[...]                                  # [H, TJ]
        ti = xr.shape[0]
        tj = xlT.shape[1]

        for h in range(heads):
            # non-separable score part: sum_c a_c * |xr_ic + xl_jc|
            # (lane-dense [TI, TJ] math, TJ on the 128-lane axis)
            e_abs = jnp.zeros((ti, tj), jnp.float32)
            for c in range(C):
                col = h * C + c
                z = xr[:, col:col + 1] + xlT[col:col + 1, :]      # [TI,1]+[1,TJ] -> [TI,TJ]
                e_abs = e_abs + att_ref[0, col] * jnp.abs(z)       # scalar from SMEM
            # leaky_relu(z) = C1*z + C2*|z|  ->  e = C1*(<a,xr_i> + <a,xl_j>) + C2*e_abs
            e = C1 * (sr[:, h:h + 1] + slT[h:h + 1, :]) + C2 * e_abs
            e = jnp.where(neigh, e, MASK_VAL)

            # --- online softmax accumulation (no [N,N] normalization)
            m_prev = m_ref[h]                                      # [TI, 1]
            m_new = jnp.maximum(m_prev, jnp.max(e, axis=-1, keepdims=True))
            corr = jnp.exp(m_prev - m_new)                         # [TI, 1]
            p = jnp.where(neigh, jnp.exp(e - m_new), 0.0)          # masked -> exactly 0
            l_ref[h] = corr * l_ref[h] + jnp.sum(p, axis=-1, keepdims=True)
            acc_ref[h] = corr * acc_ref[h] + jnp.dot(
                p.astype(jnp.bfloat16), xl_bf[:, h * C:(h + 1) * C],
                preferred_element_type=jnp.float32)                # [TI, C] on the MXU
            m_ref[h] = m_new

    # --- finalize on the last source tile: normalize + fused epilogue
    @pl.when(j == nj - 1)
    def _finalize():
        head_outs = [acc_ref[h] / l_ref[h] for h in range(heads)]  # exact divide
        if concat:
            o = head_outs[0] if heads == 1 else jnp.concatenate(head_outs, axis=-1)
        else:
            o = head_outs[0]
            for h in range(1, heads):
                o = o + head_outs[h]
            o = o * (1.0 / heads)
        o = o + bias_ref[...]
        if apply_bn_relu:
            o = jnp.maximum(o * bns_ref[...] + bnb_ref[...], 0.0)
        if apply_log_softmax:
            o = o - jnp.max(o, axis=-1, keepdims=True)
            o = o - jnp.log(jnp.sum(jnp.exp(o), axis=-1, keepdims=True))
        out_ref[...] = o                                           # single lane-dense store


def gatv2_attention(cnt, xr, xl, xlT, sr, slT, att2d, bias, bn_scale, bn_shift,
                    adj, *, heads, out_ch, concat, apply_bn_relu,
                    apply_log_softmax, tile_i=128, tile_j=256):
    n = xr.shape[0]
    hc = heads * out_ch
    f_out = hc if concat else out_ch
    assert n % tile_i == 0 and n % tile_j == 0
    if apply_log_softmax:
        assert not concat     # this model's classifier head has heads=1, concat=False

    kern = functools.partial(
        gatv2_attn_kernel, heads=heads, out_ch=out_ch, concat=concat,
        apply_bn_relu=apply_bn_relu, apply_log_softmax=apply_log_softmax)

    grid_spec = pltpu.PrefetchScalarGridSpec(
        num_scalar_prefetch=1,            # cnt -> SMEM, index_maps get it trailing
        grid=(n // tile_i, n // tile_j),
        in_specs=[
            pl.BlockSpec((tile_i, hc), lambda i, j, c: (i, 0)),      # xr (targets)
            pl.BlockSpec((tile_j, hc), lambda i, j, c: (j, 0)),      # xl (sources, MXU rhs)
            pl.BlockSpec((hc, tile_j), lambda i, j, c: (0, j)),      # xlT (lane-dense sources)
            pl.BlockSpec((tile_i, heads), lambda i, j, c: (i, 0)),   # sr (separable score, rows)
            pl.BlockSpec((heads, tile_j), lambda i, j, c: (0, j)),   # slT (separable score, cols)
            pl.BlockSpec(memory_space=pltpu.MemorySpace.SMEM),       # att vector (scalars)
            pl.BlockSpec((1, f_out), lambda i, j, c: (0, 0)),        # bias
            pl.BlockSpec((1, f_out), lambda i, j, c: (0, 0)),        # bn scale
            pl.BlockSpec((1, f_out), lambda i, j, c: (0, 0)),        # bn shift
            pl.BlockSpec((tile_i, tile_j), lambda i, j, c: (i, j)),  # adj tile (int8)
        ],
        out_specs=pl.BlockSpec((tile_i, f_out), lambda i, j, c: (i, 0)),
        scratch_shapes=[
            pltpu.VMEM((heads, tile_i, out_ch), jnp.float32),        # acc
            pltpu.VMEM((heads, tile_i, 1), jnp.float32),             # running max
            pltpu.VMEM((heads, tile_i, 1), jnp.float32),             # running denom
        ])

    return pl.pallas_call(
        kern,
        out_shape=jax.ShapeDtypeStruct((n, f_out), jnp.float32),
        grid_spec=grid_spec,
        compiler_params=pltpu.CompilerParams(
            dimension_semantics=("parallel", "arbitrary"),
            # 64 MiB physical per TC on v7x -> keep headroom; re-sweep if tiles grow.
            vmem_limit_bytes=48 * 1024 * 1024),
    )(cnt, xr, xl, xlT, sr, slT, att2d, bias, bn_scale, bn_shift, adj)


# ----------------------------------------------------------------------------
# Parameter initialization (deterministic, glorot-uniform like torch_geometric)
# ----------------------------------------------------------------------------
def glorot(key, shape, fan_in, fan_out):
    limit = jnp.sqrt(6.0 / (fan_in + fan_out))
    return jax.random.uniform(key, shape, jnp.float32, -limit, limit)


def init_gatv2_layer(key, f_in, out_ch, heads, concat):
    k1, k2, k3 = jax.random.split(key, 3)
    f_mid = heads * out_ch
    wl = glorot(k1, (f_in, f_mid), f_in, f_mid)
    wr = glorot(k2, (f_in, f_mid), f_in, f_mid)
    att = glorot(k3, (heads, out_ch), out_ch, out_ch)
    f_out = f_mid if concat else out_ch
    return dict(w=jnp.concatenate([wl, wr], axis=1),      # fused [F_in, 2*H*C]
                att=att, bias=jnp.zeros((1, f_out), jnp.float32),
                heads=heads, out_ch=out_ch, concat=concat)


def init_bn(f):
    return dict(gamma=jnp.ones((1, f), jnp.float32),
                beta=jnp.zeros((1, f), jnp.float32),
                mean=jnp.zeros((1, f), jnp.float32),
                var=jnp.ones((1, f), jnp.float32))


def init_gatv2_model(key, in_channels, hidden_channels, out_channels,
                     num_layers, num_heads):
    keys = jax.random.split(key, num_layers)
    convs, bns = [], []
    convs.append(init_gatv2_layer(keys[0], in_channels, hidden_channels,
                                  num_heads, True))
    bns.append(init_bn(hidden_channels * num_heads))
    for i in range(num_layers - 2):
        convs.append(init_gatv2_layer(keys[i + 1], hidden_channels * num_heads,
                                      hidden_channels, num_heads, True))
        bns.append(init_bn(hidden_channels * num_heads))
    convs.append(init_gatv2_layer(keys[-1], hidden_channels * num_heads,
                                  out_channels, 1, False))
    return convs, bns


def bn_scale_shift(bn):
    inv = 1.0 / jnp.sqrt(bn["var"] + BN_EPS)
    scale = bn["gamma"] * inv
    shift = bn["beta"] - bn["mean"] * scale
    return scale, shift


# ----------------------------------------------------------------------------
# Forward pass (glue in plain JAX, hot path in Pallas)
# ----------------------------------------------------------------------------
def edge_index_to_adj(edge_index, num_nodes_padded):
    # adj[i, j] = 1 iff edge j -> i ; plus self loops (GATv2Conv default).
    # NOTE: duplicate edges collapse to a single entry in this dense-mask form.
    src, dst = edge_index[0], edge_index[1]
    adj = jnp.zeros((num_nodes_padded, num_nodes_padded), jnp.int8)
    adj = adj.at[dst, src].set(1)
    idx = jnp.arange(num_nodes_padded)
    adj = adj.at[idx, idx].set(1)          # self loops (also keeps padded rows finite)
    return adj


def gatv2_forward(x, edge_index, convs, bns, *, tile_i=128, tile_j=256,
                  proj_tile=256):
    n = x.shape[0]
    step = math.lcm(tile_i, tile_j, proj_tile)
    n_pad = pl.cdiv(n, step) * step

    adj = edge_index_to_adj(edge_index, n_pad)
    # per-(i,j)-tile edge counts for block-sparse skipping (computed once, reused per layer)
    ni, nj = n_pad // tile_i, n_pad // tile_j
    cnt = adj.astype(jnp.int32).reshape(ni, tile_i, nj, tile_j).sum(axis=(1, 3))

    h = jnp.pad(x.astype(jnp.float32), ((0, n_pad - n), (0, 0)))

    num = len(convs)
    for li, conv in enumerate(convs):
        is_last = li == num - 1
        heads, C = conv["heads"], conv["out_ch"]
        hc = heads * C

        w_bf = conv["w"].astype(jnp.bfloat16)
        xl, xr = gatv2_project(h, w_bf, heads=heads, out_ch=C, tile=proj_tile)
        # TODO(synk): emit xlT directly from the projection kernel (in-kernel XLU
        # transpose) to save one extra HBM round trip of xl per layer.
        xlT = xl.T                                         # lane-dense source features [hc, N]

        # separable part of the GATv2 score: <a_h, xr_i> and <a_h, xl_j>
        # (tiny O(N*hc) matvec, kept in plain XLA)
        att = conv["att"]                                  # [H, C]
        sr = jnp.sum(xr.astype(jnp.float32).reshape(n_pad, heads, C) * att[None], axis=-1)
        sl = jnp.sum(xl.astype(jnp.float32).reshape(n_pad, heads, C) * att[None], axis=-1)
        slT = sl.T                                         # [H, N]
        att2d = att.reshape(1, hc)                         # -> SMEM in the kernel

        if not is_last:
            scale, shift = bn_scale_shift(bns[li])
        else:
            f_out = C                                      # concat=False on classifier head
            scale = jnp.ones((1, f_out), jnp.float32)
            shift = jnp.zeros((1, f_out), jnp.float32)

        h = gatv2_attention(cnt, xr, xl, xlT, sr, slT, att2d, conv["bias"],
                            scale, shift, adj,
                            heads=heads, out_ch=C, concat=conv["concat"],
                            apply_bn_relu=not is_last, apply_log_softmax=is_last,
                            tile_i=tile_i, tile_j=tile_j)
        # dropout: eval mode -> identity.  TODO(synk): training-mode dropout.
    return h[:n]


# ----------------------------------------------------------------------------
# Pure-JAX reference (same math / same bf16 rounding points) for validation
# ----------------------------------------------------------------------------
def reference_forward(x_pad, adj_i8, convs, bns):
    mask = adj_i8 != 0
    h = x_pad
    num = len(convs)
    for li, conv in enumerate(convs):
        heads, C = conv["heads"], conv["out_ch"]
        hc = heads * C
        y = jnp.dot(h.astype(jnp.bfloat16), conv["w"].astype(jnp.bfloat16),
                    preferred_element_type=jnp.float32)
        # kernel stores projected features in bf16 -> match that rounding
        xl = y[:, :hc].astype(jnp.bfloat16).astype(jnp.float32)
        xr = y[:, hc:].astype(jnp.bfloat16).astype(jnp.float32)
        head_outs = []
        for hh in range(heads):
            xl_h = xl[:, hh * C:(hh + 1) * C]
            xr_h = xr[:, hh * C:(hh + 1) * C]
            att_h = conv["att"][hh]
            s = xr_h[:, None, :] + xl_h[None, :, :]
            s = jnp.where(s > 0, s, NEG_SLOPE * s)
            e = jnp.sum(s * att_h[None, None, :], axis=-1)
            e = jnp.where(mask, e, MASK_VAL)
            p = jnp.exp(e - jnp.max(e, axis=-1, keepdims=True))
            p = jnp.where(mask, p, 0.0)
            num_h = jnp.dot(p.astype(jnp.bfloat16), xl_h.astype(jnp.bfloat16),
                            preferred_element_type=jnp.float32)
            head_outs.append(num_h / jnp.sum(p, axis=-1, keepdims=True))
        if conv["concat"]:
            o = jnp.concatenate(head_outs, axis=-1)
        else:
            o = sum(head_outs) / heads
        o = o + conv["bias"]
        if li < num - 1:
            scale, shift = bn_scale_shift(bns[li])
            o = jnp.maximum(o * scale + shift, 0.0)
        else:
            o = jax.nn.log_softmax(o, axis=-1)
        h = o
    return h


# ----------------------------------------------------------------------------
if __name__ == "__main__":
    key = jax.random.PRNGKey(0)
    k_x, k_src, k_dst, k_params = jax.random.split(key, 4)

    N = 200             # nodes (pads to 256 -> 2x1 attention grid, exercises skip + online softmax)
    E = 800             # edges
    IN_CH = 16
    HIDDEN = 16
    OUT_CH = 8
    HEADS = 2
    NUM_LAYERS = 3

    x = jax.random.normal(k_x, (N, IN_CH), jnp.float32)
    edge_index = jnp.stack([
        jax.random.randint(k_src, (E,), 0, N),
        jax.random.randint(k_dst, (E,), 0, N),
    ], axis=0)  # [2, E], row 0 = source, row 1 = target

    convs, bns = init_gatv2_model(k_params, IN_CH, HIDDEN, OUT_CH,
                                  NUM_LAYERS, HEADS)

    out = gatv2_forward(x, edge_index, convs, bns)
    out = jax.block_until_ready(out)

    assert out.shape == (N, OUT_CH), out.shape
    # log_softmax rows must exponentiate-sum to 1
    row_sums = jnp.sum(jnp.exp(out), axis=-1)
    assert bool(jnp.all(jnp.abs(row_sums - 1.0) < 1e-3)), row_sums

    # numerical check against a dense pure-JAX reference (same bf16 rounding points)
    step = math.lcm(128, 256, 256)
    n_pad = pl.cdiv(N, step) * step
    x_pad = jnp.pad(x, ((0, n_pad - N), (0, 0)))
    adj = edge_index_to_adj(edge_index, n_pad)
    ref = reference_forward(x_pad, adj, convs, bns)[:N]
    max_diff = float(jnp.max(jnp.abs(out - ref)))
    assert max_diff < 5e-2, f"max abs diff vs reference = {max_diff}"

    print("KERNEL_OK")
</pallas_src>

<mosaic_0001>
module attributes {stable_mosaic.version = 11 : i64} {
  func.func @project_kernel(%arg0: i32, %arg1: memref<256x16xf32, #tpu.memory_space<vmem>>, %arg2: memref<16x64xbf16, #tpu.memory_space<vmem>>, %arg3: memref<256x32xbf16, #tpu.memory_space<vmem>>, %arg4: memref<256x32xbf16, #tpu.memory_space<vmem>>) attributes {dimension_semantics = [#tpu.dimension_semantics<parallel>], iteration_bounds = array<i64: 1>, scalar_prefetch = 0 : i64, scratch_operands = 0 : i64, tpu.core_type = #tpu.core_type<tc>, window_params = [{transform_indices = @transform_0, window_bounds = array<i64: 256, 16>}, {pipeline_mode = #tpu.pipeline_mode<synchronous>, transform_indices = @transform_1, window_bounds = array<i64: 16, 64>}, {transform_indices = @transform_2, window_bounds = array<i64: 256, 32>}, {transform_indices = @transform_3, window_bounds = array<i64: 256, 32>}]} {
    %c0 = arith.constant 0 : index
    %c0_0 = arith.constant 0 : index
    %0 = vector.load %arg1[%c0, %c0_0] : memref<256x16xf32, #tpu.memory_space<vmem>>, vector<256x16xf32>
    %1 = arith.truncf %0 : vector<256x16xf32> to vector<256x16xbf16>
    %c0_1 = arith.constant 0 : index
    %c0_2 = arith.constant 0 : index
    %2 = vector.load %arg2[%c0_1, %c0_2] : memref<16x64xbf16, #tpu.memory_space<vmem>>, vector<16x64xbf16>
    %cst = arith.constant dense<0.000000e+00> : vector<256x64xf32>
    %3 = tpu.matmul %1, %2, %cst {dimension_numbers = #tpu.dot_dimension_numbers<[1], [0], [0], [1], [0, 0, 1, 1], [], []>} : vector<256x16xbf16>, vector<16x64xbf16>, vector<256x64xf32> -> vector<256x64xf32>
    %4 = vector.extract_strided_slice %3 {offsets = [0, 0], sizes = [256, 32], strides = [1, 1]} : vector<256x64xf32> to vector<256x32xf32>
    %5 = arith.truncf %4 : vector<256x32xf32> to vector<256x32xbf16>
    %c0_3 = arith.constant 0 : index
    %c0_4 = arith.constant 0 : index
    %6 = vector.load %arg3[%c0_3, %c0_4] : memref<256x32xbf16, #tpu.memory_space<vmem>>, vector<256x32xbf16>
    tpu.vector_store %arg3[%c0_3, %c0_4], %5 {strides = array<i32>} : memref<256x32xbf16, #tpu.memory_space<vmem>>, vector<256x32xbf16>,
    %7 = vector.extract_strided_slice %3 {offsets = [0, 32], sizes = [256, 32], strides = [1, 1]} : vector<256x64xf32> to vector<256x32xf32>
    %8 = arith.truncf %7 : vector<256x32xf32> to vector<256x32xbf16>
    %c0_5 = arith.constant 0 : index
    %c0_6 = arith.constant 0 : index
    %9 = vector.load %arg4[%c0_5, %c0_6] : memref<256x32xbf16, #tpu.memory_space<vmem>>, vector<256x32xbf16>
    tpu.vector_store %arg4[%c0_5, %c0_6], %8 {strides = array<i32>} : memref<256x32xbf16, #tpu.memory_space<vmem>>, vector<256x32xbf16>,
    return
  }
  func.func @transform_0(%arg0: i32) -> (i32, i32) {
    %c0_i32 = arith.constant 0 : i32
    %c0_i32_0 = arith.constant 0 : i32
    return %arg0, %c0_i32 : i32, i32
  }
  func.func @transform_1(%arg0: i32) -> (i32, i32) {
    %c0_i32 = arith.constant 0 : i32
    %c0_i32_0 = arith.constant 0 : i32
    %c0_i32_1 = arith.constant 0 : i32
    return %c0_i32, %c0_i32_0 : i32, i32
  }
  func.func @transform_2(%arg0: i32) -> (i32, i32) {
    %c0_i32 = arith.constant 0 : i32
    %c0_i32_0 = arith.constant 0 : i32
    return %arg0, %c0_i32 : i32, i32
  }
  func.func @transform_3(%arg0: i32) -> (i32, i32) {
    %c0_i32 = arith.constant 0 : i32
    %c0_i32_0 = arith.constant 0 : i32
    return %arg0, %c0_i32 : i32, i32
  }
}

</mosaic_0001>

<bundles_post_ra>
// kernel: tpu_custom_call.1
= control target key start
LH: loop header
LB: loop body
LE: loop exit
PB: predicated region body
PF: predicated region fallthrough
CT: control target
= control target key end

     0   :  { %vm70_vm0 = vcmask 130048   ;;  %vm240_vm1 = vcmask 257024   ;;  %s466_s23 = smov 96   ;;  %s890_s1 = inlined_call_operand.vmem [shape: bf16[16,64], index: 1, kind: input, shape index: {}]   ;;  %s891_s0 = inlined_call_operand.vmem [shape: f32[256,16], index: 0, kind: input, shape index: {}]   ;;  %s892_s2 = inlined_call_operand.vmem [shape: bf16[256,32], index: 2, kind: output, shape index: {0}]   ;;  %s893_s3 = inlined_call_operand.vmem [shape: bf16[256,32], index: 3, kind: output, shape index: {1}]  }
   0x1   :  { %v461_v0 = vld [vmem:[%s890_s1] sm:$0xff]  ;;  %v15_v2 = vld [vmem:[%s891_s0 + $0x8] sm:$0xff]  ;;  %v16_v13 = vld [vmem:[%s891_s0 + $0x10] sm:$0xff] }
   0x2   :  { %v14_v1 = vld [vmem:[%s891_s0] sm:$0xff]  ;;  %v31_v5 = vld [vmem:[%s891_s0 + $0x88] sm:$0xff]  ;;  %126 = vmatpush.bf16.msra.mxu0 %v461_v0  ;;  %463 = vmatpush.bf16.msra.mxu2 %v461_v0  ;;  %v17_v14 = vld [vmem:[%s891_s0 + $0x18] sm:$0xff] }
   0x3   :  { %v46_v3 = vpack.c.bf16 %v15_v2, %v14_v1  ;;  %v30_v4 = vld [vmem:[%s891_s0 + $0x80] sm:$0xff]  ;;  %v39_v8 = vld [vmem:[%s891_s0 + $0xc8] sm:$0xff]  ;;  %464 = vmatpush.bf16.msra.mxu3 %v461_v0  ;;  %462 = vmatpush.bf16.msra.mxu1 %v461_v0  ;;  %v40_v15 = vld [vmem:[%s891_s0 + $0xd0] sm:$0xff]  ;;  %v47_v21 = vpack.c.bf16 %v17_v14, %v16_v13 }
   0x4   :  { %v38_v6 = vld [vmem:[%s891_s0 + $0xc0] sm:$0xff]  ;;  %v54_v7 = vpack.c.bf16 %v31_v5, %v30_v4  ;;  %v23_v10 = vld [vmem:[%s891_s0 + $0x48] sm:$0xff]  ;;  %v32_v16 = vld [vmem:[%s891_s0 + $0x90] sm:$0xff] }
   0x5   :  { %v22_v9 = vld [vmem:[%s891_s0 + $0x40] sm:$0xff]  ;;  %v58_v11 = vpack.c.bf16 %v39_v8, %v38_v6  ;;  %445 = vmatmul.msk.bf16.vlgmr.msra.gmra.mxu0 %vm70_vm0, %v46_v3  ;;  %v33_v17 = vld [vmem:[%s891_s0 + $0x98] sm:$0xff]  ;;  %v24_v19 = vld [vmem:[%s891_s0 + $0x50] sm:$0xff] }
   0x6   :  { %v50_v12 = vpack.c.bf16 %v23_v10, %v22_v9  ;;  %453 = vmatmul.msk.bf16.vlgmr.msra.gmra.mxu2 %vm70_vm0, %v54_v7  ;;  %v41_v18 = vld [vmem:[%s891_s0 + $0xd8] sm:$0xff]  ;;  %v55_v22 = vpack.c.bf16 %v33_v17, %v32_v16  ;;  %v18_v25 = vld [vmem:[%s891_s0 + $0x20] sm:$0xff]  ;;  %v19_v26 = vld [vmem:[%s891_s0 + $0x28] sm:$0xff] }
   0x7   :  { %457 = vmatmul.msk.bf16.vlgmr.msra.gmra.mxu3 %vm70_vm0, %v58_v11  ;;  %v25_v20 = vld [vmem:[%s891_s0 + $0x58] sm:$0xff]  ;;  %v59_v23 = vpack.c.bf16 %v41_v18, %v40_v15  ;;  %v34_v27 = vld [vmem:[%s891_s0 + $0xa0] sm:$0xff]  ;;  %v35_v28 = vld [vmem:[%s891_s0 + $0xa8] sm:$0xff]  ;;  %v48_v33 = vpack.c.bf16 %v19_v26, %v18_v25 }
   0x8   :  { %449 = vmatmul.msk.bf16.vlgmr.msra.gmra.mxu1 %vm70_vm0, %v50_v12  ;;  %v51_v24 = vpack.c.bf16 %v25_v20, %v24_v19  ;;  %v42_v29 = vld [vmem:[%s891_s0 + $0xe0] sm:$0xff]  ;;  %v43_v30 = vld [vmem:[%s891_s0 + $0xe8] sm:$0xff]  ;;  %v56_v34 = vpack.c.bf16 %v35_v28, %v34_v27  ;;  %v36_v37 = vld [vmem:[%s891_s0 + $0xb0] sm:$0xff] }
   0x9   :  { %v26_v31 = vld [vmem:[%s891_s0 + $0x60] sm:$0xff]  ;;  %v27_v32 = vld [vmem:[%s891_s0 + $0x68] sm:$0xff]  ;;  %v60_v35 = vpack.c.bf16 %v43_v30, %v42_v29  ;;  %v37_v38 = vld [vmem:[%s891_s0 + $0xb8] sm:$0xff] }
   0xa   :  { %v52_v36 = vpack.c.bf16 %v27_v32, %v26_v31  ;;  %v20_v39 = vld [vmem:[%s891_s0 + $0x30] sm:$0xff]  ;;  %v21_v40 = vld [vmem:[%s891_s0 + $0x38] sm:$0xff]  ;;  %v57_v45 = vpack.c.bf16 %v37_v38, %v36_v37 }
   0xb   :  { %v28_v41 = vld [vmem:[%s891_s0 + $0x70] sm:$0xff]  ;;  %v29_v42 = vld [vmem:[%s891_s0 + $0x78] sm:$0xff]  ;;  %v49_v46 = vpack.c.bf16 %v21_v40, %v20_v39 }
   0xc   :  { %v44_v43 = vld [vmem:[%s891_s0 + $0xf0] sm:$0xff]  ;;  %v45_v44 = vld [vmem:[%s891_s0 + $0xf8] sm:$0xff]  ;;  %v53_v47 = vpack.c.bf16 %v29_v42, %v28_v41 }
   0xd   :  { %v61_v48 = vpack.c.bf16 %v45_v44, %v44_v43 }
  0x15   :  { %446 = vmatmul.msk.bf16.gmra.mxu0 %vm70_vm0, %v47_v21 }
  0x16   :  { %454 = vmatmul.msk.bf16.gmra.mxu2 %vm70_vm0, %v55_v22 }
  0x17   :  { %458 = vmatmul.msk.bf16.gmra.mxu3 %vm70_vm0, %v59_v23 }
  0x18   :  { %450 = vmatmul.msk.bf16.gmra.mxu1 %vm70_vm0, %v51_v24 }
  0x25   :  { %447 = vmatmul.msk.bf16.gmra.mxu0 %vm70_vm0, %v48_v33 }
  0x26   :  { %455 = vmatmul.msk.bf16.gmra.mxu2 %vm70_vm0, %v56_v34 }
  0x27   :  { %459 = vmatmul.msk.bf16.gmra.mxu3 %vm70_vm0, %v60_v35 }
  0x28   :  { %451 = vmatmul.msk.bf16.gmra.mxu1 %vm70_vm0, %v52_v36 }
  0x35   :  { %448 = vmatmul.msk.bf16.gmra.mxu0 %vm70_vm0, %v49_v46 }
  0x36   :  { %456 = vmatmul.msk.bf16.gmra.mxu2 %vm70_vm0, %v57_v45 }
  0x37   :  { %460 = vmatmul.msk.bf16.gmra.mxu3 %vm70_vm0, %v61_v48 }
  0x38   :  { %452 = vmatmul.msk.bf16.gmra.mxu1 %vm70_vm0, %v53_v47 }
  0x82   :  { %v128_v49 = vpop.f32.mrf.mxu0 }
  0x83   :  { %v208_v50 = vpack.c.bf16 %v128_v49, %v128_v49 }
  0x85   :  { %v148_v51 = vpop.f32.mrf.mxu1  ;;  %241 = vst.msk [vmem:[%s892_s2] sm:$0xf] %vm240_vm1, %v208_v50  ;;  %305 = vrot.lane.b32.xlu0 %v208_v50, %s466_s23 }
  0x86   :  { %v216_v52 = vpack.c.bf16 %v148_v51, %v148_v51 }
  0x88   :  { %249 = vst.msk [vmem:[%s892_s2 + $0x20] sm:$0xf] %vm240_vm1, %v216_v52  ;;  %321 = vrot.lane.b32.xlu2 %v216_v52, %s466_s23 }
  0x89   :  { %v168_v53 = vpop.f32.mrf.mxu2 }
  0x8a   :  { %v224_v54 = vpack.c.bf16 %v168_v53, %v168_v53  ;;  %v188_v55 = vpop.f32.mrf.mxu3  ;;  %v130_v57 = vpop.f32.mrf.mxu0 }
  0x8b   :  { %v232_v56 = vpack.c.bf16 %v188_v55, %v188_v55  ;;  %v209_v58 = vpack.c.bf16 %v130_v57, %v130_v57 }
  0x8c   :  { %257 = vst.msk [vmem:[%s892_s2 + $0x40] sm:$0xf] %vm240_vm1, %v224_v54  ;;  %337 = vrot.lane.b32.xlu1 %v224_v54, %s466_s23 }
  0x8d   :  { %v150_v59 = vpop.f32.mrf.mxu1  ;;  %265 = vst.msk [vmem:[%s892_s2 + $0x60] sm:$0xf] %vm240_vm1, %v232_v56  ;;  %353 = vrot.lane.b32.xlu0 %v232_v56, %s466_s23 }
  0x8e   :  { %v217_v60 = vpack.c.bf16 %v150_v59, %v150_v59  ;;  %242 = vst.msk [vmem:[%s892_s2 + $0x4] sm:$0xf] %vm240_vm1, %v209_v58 }
  0x90   :  { %250 = vst.msk [vmem:[%s892_s2 + $0x24] sm:$0xf] %vm240_vm1, %v217_v60 }
  0x91   :  { %v170_v61 = vpop.f32.mrf.mxu2 }
  0x92   :  { %v225_v62 = vpack.c.bf16 %v170_v61, %v170_v61  ;;  %v190_v63 = vpop.f32.mrf.mxu3  ;;  %v133_v1 = vpop.f32.mrf.mxu0 }
  0x93   :  { %v233_v0 = vpack.c.bf16 %v190_v63, %v190_v63  ;;  %v210_v2 = vpack.c.bf16 %v133_v1, %v133_v1 }
  0x94   :  { %258 = vst.msk [vmem:[%s892_s2 + $0x44] sm:$0xf] %vm240_vm1, %v225_v62  ;;  %339 = vrot.lane.b32.xlu2 %v225_v62, %s466_s23 }
  0x95   :  { %v153_v3 = vpop.f32.mrf.mxu1  ;;  %266 = vst.msk [vmem:[%s892_s2 + $0x64] sm:$0xf] %vm240_vm1, %v233_v0  ;;  %355 = vrot.lane.b32.xlu1 %v233_v0, %s466_s23  ;;  %307 = vrot.lane.b32.xlu0 %v209_v58, %s466_s23 }
  0x96   :  { %v218_v4 = vpack.c.bf16 %v153_v3, %v153_v3  ;;  %243 = vst.msk [vmem:[%s892_s2 + $0x8] sm:$0xf] %vm240_vm1, %v210_v2 }
  0x98   :  { %251 = vst.msk [vmem:[%s892_s2 + $0x28] sm:$0xf] %vm240_vm1, %v218_v4 }
  0x99   :  { %v173_v5 = vpop.f32.mrf.mxu2 }
  0x9a   :  { %v193_v6 = vpop.f32.mrf.mxu3  ;;  %v226_v7 = vpack.c.bf16 %v173_v5, %v173_v5  ;;  %v135_v9 = vpop.f32.mrf.mxu0 }
  0x9b   :  { %v234_v8 = vpack.c.bf16 %v193_v6, %v193_v6  ;;  %v211_v10 = vpack.c.bf16 %v135_v9, %v135_v9 }
  0x9c   :  { %259 = vst.msk [vmem:[%s892_s2 + $0x48] sm:$0xf] %vm240_vm1, %v226_v7 }
  0x9d   :  { %v155_v11 = vpop.f32.mrf.mxu1  ;;  %267 = vst.msk [vmem:[%s892_s2 + $0x68] sm:$0xf] %vm240_vm1, %v234_v8  ;;  %357 = vrot.lane.b32.xlu2 %v234_v8, %s466_s23  ;;  %309 = vrot.lane.b32.xlu1 %v210_v2, %s466_s23 }
  0x9e   :  { %v219_v12 = vpack.c.bf16 %v155_v11, %v155_v11  ;;  %244 = vst.msk [vmem:[%s892_s2 + $0xc] sm:$0xf] %vm240_vm1, %v211_v10  ;;  %323 = vrot.lane.b32.xlu0 %v217_v60, %s466_s23 }
  0xa0   :  { %252 = vst.msk [vmem:[%s892_s2 + $0x2c] sm:$0xf] %vm240_vm1, %v219_v12 }
  0xa1   :  { %v175_v13 = vpop.f32.mrf.mxu2 }
  0xa2   :  { %v227_v14 = vpack.c.bf16 %v175_v13, %v175_v13  ;;  %v195_v15 = vpop.f32.mrf.mxu3  ;;  %v138_v16 = vpop.f32.mrf.mxu0 }
  0xa3   :  { %v235_v17 = vpack.c.bf16 %v195_v15, %v195_v15  ;;  %v212_v18 = vpack.c.bf16 %v138_v16, %v138_v16 }
  0xa4   :  { %260 = vst.msk [vmem:[%s892_s2 + $0x4c] sm:$0xf] %vm240_vm1, %v227_v14 }
  0xa5   :  { %v158_v19 = vpop.f32.mrf.mxu1  ;;  %327 = vrot.lane.b32.xlu2 %v219_v12, %s466_s23  ;;  %325 = vrot.lane.b32.xlu1 %v218_v4, %s466_s23  ;;  %268 = vst.msk [vmem:[%s892_s2 + $0x6c] sm:$0xf] %vm240_vm1, %v235_v17 }
  0xa6   :  { %v220_v20 = vpack.c.bf16 %v158_v19, %v158_v19  ;;  %341 = vrot.lane.b32.xlu0 %v226_v7, %s466_s23  ;;  %245 = vst.msk [vmem:[%s892_s2 + $0x10] sm:$0xf] %vm240_vm1, %v212_v18 }
  0xa8   :  { %253 = vst.msk [vmem:[%s892_s2 + $0x30] sm:$0xf] %vm240_vm1, %v220_v20 }
  0xa9   :  { %v178_v21 = vpop.f32.mrf.mxu2 }
  0xaa   :  { %v228_v22 = vpack.c.bf16 %v178_v21, %v178_v21  ;;  %v198_v23 = vpop.f32.mrf.mxu3  ;;  %v140_v25 = vpop.f32.mrf.mxu0 }
  0xab   :  { %v236_v24 = vpack.c.bf16 %v198_v23, %v198_v23  ;;  %v213_v26 = vpack.c.bf16 %v140_v25, %v140_v25 }
  0xac   :  { %261 = vst.msk [vmem:[%s892_s2 + $0x50] sm:$0xf] %vm240_vm1, %v228_v22 }
  0xad   :  { %v160_v27 = vpop.f32.mrf.mxu1  ;;  %311 = vrot.lane.b32.xlu1 %v211_v10, %s466_s23  ;;  %313 = vrot.lane.b32.xlu2 %v212_v18, %s466_s23  ;;  %269 = vst.msk [vmem:[%s892_s2 + $0x70] sm:$0xf] %vm240_vm1, %v236_v24 }
  0xae   :  { %v221_v28 = vpack.c.bf16 %v160_v27, %v160_v27  ;;  %359 = vrot.lane.b32.xlu0 %v235_v17, %s466_s23  ;;  %246 = vst.msk [vmem:[%s892_s2 + $0x14] sm:$0xf] %vm240_vm1, %v213_v26 }
  0xb0   :  { %254 = vst.msk [vmem:[%s892_s2 + $0x34] sm:$0xf] %vm240_vm1, %v221_v28 }
  0xb1   :  { %v180_v29 = vpop.f32.mrf.mxu2 }
  0xb2   :  { %v229_v30 = vpack.c.bf16 %v180_v29, %v180_v29  ;;  %v200_v31 = vpop.f32.mrf.mxu3  ;;  %v143_v33 = vpop.f32.mrf.mxu0 }
  0xb3   :  { %v237_v32 = vpack.c.bf16 %v200_v31, %v200_v31  ;;  %v214_v34 = vpack.c.bf16 %v143_v33, %v143_v33 }
  0xb4   :  { %262 = vst.msk [vmem:[%s892_s2 + $0x54] sm:$0xf] %vm240_vm1, %v229_v30 }
  0xb5   :  { %v163_v35 = vpop.f32.mrf.mxu1  ;;  %343 = vrot.lane.b32.xlu1 %v227_v14, %s466_s23  ;;  %345 = vrot.lane.b32.xlu2 %v228_v22, %s466_s23  ;;  %270 = vst.msk [vmem:[%s892_s2 + $0x74] sm:$0xf] %vm240_vm1, %v237_v32 }
  0xb6   :  { %v222_v36 = vpack.c.bf16 %v163_v35, %v163_v35  ;;  %329 = vrot.lane.b32.xlu0 %v220_v20, %s466_s23  ;;  %247 = vst.msk [vmem:[%s892_s2 + $0x18] sm:$0xf] %vm240_vm1, %v214_v34 }
  0xb8   :  { %255 = vst.msk [vmem:[%s892_s2 + $0x38] sm:$0xf] %vm240_vm1, %v222_v36 }
  0xb9   :  { %v183_v37 = vpop.f32.mrf.mxu2 }
  0xba   :  { %v230_v38 = vpack.c.bf16 %v183_v37, %v183_v37  ;;  %v203_v39 = vpop.f32.mrf.mxu3  ;;  %v145_v40 = vpop.f32.mrf.mxu0 }
  0xbb   :  { %v238_v41 = vpack.c.bf16 %v203_v39, %v203_v39  ;;  %v215_v42 = vpack.c.bf16 %v145_v40, %v145_v40 }
  0xbc   :  { %263 = vst.msk [vmem:[%s892_s2 + $0x58] sm:$0xf] %vm240_vm1, %v230_v38 }
  0xbd   :  { %v165_v43 = vpop.f32.mrf.mxu1  ;;  %361 = vrot.lane.b32.xlu1 %v236_v24, %s466_s23  ;;  %315 = vrot.lane.b32.xlu2 %v213_v26, %s466_s23  ;;  %271 = vst.msk [vmem:[%s892_s2 + $0x78] sm:$0xf] %vm240_vm1, %v238_v41 }
  0xbe   :  { %v223_v44 = vpack.c.bf16 %v165_v43, %v165_v43  ;;  %347 = vrot.lane.b32.xlu0 %v229_v30, %s466_s23  ;;  %248 = vst.msk [vmem:[%s892_s2 + $0x1c] sm:$0xf] %vm240_vm1, %v215_v42 }
  0xc0   :  { %256 = vst.msk [vmem:[%s892_s2 + $0x3c] sm:$0xf] %vm240_vm1, %v223_v44 }
  0xc1   :  { %v185_v45 = vpop.f32.mrf.mxu2 }
  0xc2   :  { %v231_v46 = vpack.c.bf16 %v185_v45, %v185_v45  ;;  %v205_v47 = vpop.f32.mrf.mxu3 }
  0xc3   :  { %v239_v48 = vpack.c.bf16 %v205_v47, %v205_v47 }
  0xc4   :  { %264 = vst.msk [vmem:[%s892_s2 + $0x5c] sm:$0xf] %vm240_vm1, %v231_v46 }
  0xc5   :  { %331 = vrot.lane.b32.xlu1 %v221_v28, %s466_s23  ;;  %333 = vrot.lane.b32.xlu2 %v222_v36, %s466_s23  ;;  %272 = vst.msk [vmem:[%s892_s2 + $0x7c] sm:$0xf] %vm240_vm1, %v239_v48 }
  0xc6   :  { %317 = vrot.lane.b32.xlu0 %v214_v34, %s466_s23 }
  0xcd   :  { %349 = vrot.lane.b32.xlu1 %v230_v38, %s466_s23  ;;  %351 = vrot.lane.b32.xlu2 %v231_v46, %s466_s23 }
  0xce   :  { %335 = vrot.lane.b32.xlu0 %v223_v44, %s466_s23 }
  0xd5   :  { %363 = vrot.lane.b32.xlu2 %v237_v32, %s466_s23  ;;  %319 = vrot.lane.b32.xlu1 %v215_v42, %s466_s23 }
  0xd6   :  { %365 = vrot.lane.b32.xlu0 %v238_v41, %s466_s23 }
  0xdd   :  { %367 = vrot.lane.b32.xlu1 %v239_v48, %s466_s23 }
  0xe2   :  { %v322_v49 = vpop.permute.xlu2 %321 }
  0xe3   :  { %409 = vst.msk [vmem:[%s893_s3 + $0x20] sm:$0xf] %vm240_vm1, %v322_v49 }
  0xee   :  { %v340_v50 = vpop.permute.xlu2 %339 }
  0xef   :  { %418 = vst.msk [vmem:[%s893_s3 + $0x44] sm:$0xf] %vm240_vm1, %v340_v50 }
  0xf7   :  { %v358_v51 = vpop.permute.xlu2 %357  ;;  %v306_v52 = vpop.permute.xlu0 %305 }
  0xf8   :  { %427 = vst.msk [vmem:[%s893_s3 + $0x68] sm:$0xf] %vm240_vm1, %v358_v51 }
  0xf9   :  { %401 = vst.msk [vmem:[%s893_s3] sm:$0xf] %vm240_vm1, %v306_v52 }
  0xfe   :  { %v338_v53 = vpop.permute.xlu1 %337 }
  0xff   :  { %417 = vst.msk [vmem:[%s893_s3 + $0x40] sm:$0xf] %vm240_vm1, %v338_v53  ;;  %v328_v54 = vpop.permute.xlu2 %327  ;;  %v354_v55 = vpop.permute.xlu0 %353 }
 0x100   :  { %412 = vst.msk [vmem:[%s893_s3 + $0x2c] sm:$0xf] %vm240_vm1, %v328_v54 }
 0x101   :  { %425 = vst.msk [vmem:[%s893_s3 + $0x60] sm:$0xf] %vm240_vm1, %v354_v55 }
 0x107   :  { %v356_v56 = vpop.permute.xlu1 %355  ;;  %v314_v57 = vpop.permute.xlu2 %313 }
 0x108   :  { %426 = vst.msk [vmem:[%s893_s3 + $0x64] sm:$0xf] %vm240_vm1, %v356_v56  ;;  %v308_v58 = vpop.permute.xlu0 %307 }
 0x109   :  { %405 = vst.msk [vmem:[%s893_s3 + $0x10] sm:$0xf] %vm240_vm1, %v314_v57 }
 0x10a   :  { %402 = vst.msk [vmem:[%s893_s3 + $0x4] sm:$0xf] %vm240_vm1, %v308_v58 }
 0x10f   :  { %v310_v59 = vpop.permute.xlu1 %309  ;;  %v346_v60 = vpop.permute.xlu2 %345 }
 0x110   :  { %403 = vst.msk [vmem:[%s893_s3 + $0x8] sm:$0xf] %vm240_vm1, %v310_v59  ;;  %v324_v61 = vpop.permute.xlu0 %323 }
 0x111   :  { %421 = vst.msk [vmem:[%s893_s3 + $0x50] sm:$0xf] %vm240_vm1, %v346_v60 }
 0x112   :  { %410 = vst.msk [vmem:[%s893_s3 + $0x24] sm:$0xf] %vm240_vm1, %v324_v61 }
 0x117   :  { %v326_v62 = vpop.permute.xlu1 %325  ;;  %v316_v63 = vpop.permute.xlu2 %315 }
 0x118   :  { %411 = vst.msk [vmem:[%s893_s3 + $0x28] sm:$0xf] %vm240_vm1, %v326_v62  ;;  %v342_v0 = vpop.permute.xlu0 %341 }
 0x119   :  { %406 = vst.msk [vmem:[%s893_s3 + $0x14] sm:$0xf] %vm240_vm1, %v316_v63 }
 0x11a   :  { %419 = vst.msk [vmem:[%s893_s3 + $0x48] sm:$0xf] %vm240_vm1, %v342_v0 }
 0x11f   :  { %v312_v1 = vpop.permute.xlu1 %311  ;;  %v334_v2 = vpop.permute.xlu2 %333 }
 0x120   :  { %404 = vst.msk [vmem:[%s893_s3 + $0xc] sm:$0xf] %vm240_vm1, %v312_v1  ;;  %v360_v3 = vpop.permute.xlu0 %359 }
 0x121   :  { %415 = vst.msk [vmem:[%s893_s3 + $0x38] sm:$0xf] %vm240_vm1, %v334_v2 }
 0x122   :  { %428 = vst.msk [vmem:[%s893_s3 + $0x6c] sm:$0xf] %vm240_vm1, %v360_v3 }
 0x127   :  { %v344_v4 = vpop.permute.xlu1 %343  ;;  %v352_v5 = vpop.permute.xlu2 %351 }
 0x128   :  { %420 = vst.msk [vmem:[%s893_s3 + $0x4c] sm:$0xf] %vm240_vm1, %v344_v4  ;;  %v330_v6 = vpop.permute.xlu0 %329 }
 0x129   :  { %424 = vst.msk [vmem:[%s893_s3 + $0x5c] sm:$0xf] %vm240_vm1, %v352_v5 }
 0x12a   :  { %413 = vst.msk [vmem:[%s893_s3 + $0x30] sm:$0xf] %vm240_vm1, %v330_v6 }
 0x12f   :  { %v362_v7 = vpop.permute.xlu1 %361  ;;  %v364_v8 = vpop.permute.xlu2 %363 }
 0x130   :  { %429 = vst.msk [vmem:[%s893_s3 + $0x70] sm:$0xf] %vm240_vm1, %v362_v7  ;;  %v348_v9 = vpop.permute.xlu0 %347 }
 0x131   :  { %430 = vst.msk [vmem:[%s893_s3 + $0x74] sm:$0xf] %vm240_vm1, %v364_v8 }
 0x132   :  { %422 = vst.msk [vmem:[%s893_s3 + $0x54] sm:$0xf] %vm240_vm1, %v348_v9 }
 0x137   :  { %v332_v10 = vpop.permute.xlu1 %331 }
 0x138   :  { %414 = vst.msk [vmem:[%s893_s3 + $0x34] sm:$0xf] %vm240_vm1, %v332_v10  ;;  %v318_v11 = vpop.permute.xlu0 %317 }
 0x139   :  { %407 = vst.msk [vmem:[%s893_s3 + $0x18] sm:$0xf] %vm240_vm1, %v318_v11 }
 0x13f   :  { %v350_v12 = vpop.permute.xlu1 %349 }
 0x140   :  { %423 = vst.msk [vmem:[%s893_s3 + $0x58] sm:$0xf] %vm240_vm1, %v350_v12  ;;  %v336_v13 = vpop.permute.xlu0 %335 }
 0x141   :  { %416 = vst.msk [vmem:[%s893_s3 + $0x3c] sm:$0xf] %vm240_vm1, %v336_v13 }
 0x147   :  { %v320_v14 = vpop.permute.xlu1 %319 }
 0x148   :  { %408 = vst.msk [vmem:[%s893_s3 + $0x1c] sm:$0xf] %vm240_vm1, %v320_v14  ;;  %v366_v15 = vpop.permute.xlu0 %365 }
 0x149   :  { %431 = vst.msk [vmem:[%s893_s3 + $0x78] sm:$0xf] %vm240_vm1, %v366_v15 }
 0x14f   :  { %v368_v16 = vpop.permute.xlu1 %367 }
 0x150   :  { %432 = vst.msk [vmem:[%s893_s3 + $0x7c] sm:$0xf] %vm240_vm1, %v368_v16 }

</bundles_post_ra>
